<compile_context>
chip_gen: v7x
topology: tpu7x:2x2x1
jax: 0.10.0
libtpu: 0.0.40
codegen_flags: <defaults>
</compile_context>

<pallas_src>
import numpy as np
import jax
import jax.numpy as jnp
from jax import lax
from jax.experimental import pallas as pl
from jax.experimental.pallas import tpu as pltpu

_SUBLANE = 8
_LANE = 128


def _round_up(n, m):
    return (n + m - 1) // m * m


# ---------------------------------------------------------------------------
# Kernel: one grid step == one time step.  State lives in VMEM scratch.
# ---------------------------------------------------------------------------
def _fused_lstm_seq_kernel(ids_ref, hc_in_ref, ew0_ref, whh0_ref, wstk_ref,
                           b_ref, fcw_ref, fcb_ref,
                           logits_ref, hc_out_ref,
                           h_scr, c_scr):
    t = pl.program_id(0)
    num_layers = b_ref.shape[0]
    hid = whh0_ref.shape[0]
    batch = hc_in_ref.shape[0]
    vocab = ew0_ref.shape[0]
    mm_dtype = ew0_ref.dtype            # f32 (v5e / exact) or bf16 (v6e / v7x)

    # ---- unpack the lane-dense (B, 2*L*H) state slab into per-layer scratch
    @pl.when(t == 0)
    def _():
        slab = hc_in_ref[...]
        for l in range(num_layers):
            h_scr[l] = slab[:, l * hid:(l + 1) * hid]
            c_scr[l] = slab[:, (num_layers + l) * hid:(num_layers + l + 1) * hid]

    # ---- token one-hot (embedding already folded into ew0 = E @ W_ih[0]^T)
    ids = ids_ref[0]                                                  # (B, 1)
    vocab_iota = lax.broadcasted_iota(jnp.int32, (batch, vocab), 1)
    onehot = jnp.where(vocab_iota == ids, 1.0, 0.0).astype(mm_dtype)  # (B, V)

    # lane mask: lanes [2H, 3H) are the "g" gate (tanh); the rest are sigmoid
    lane = lax.broadcasted_iota(jnp.int32, (batch, 4 * hid), 1)
    is_g = (lane >= 2 * hid) & (lane < 3 * hid)

    x = None
    for l in range(num_layers):                 # static unroll, L is tiny
        h_prev = h_scr[l]
        c_prev = c_scr[l]
        if l == 0:
            gates = (jnp.dot(onehot, ew0_ref[...],
                             preferred_element_type=jnp.float32)
                     + jnp.dot(h_prev.astype(mm_dtype), whh0_ref[...],
                               preferred_element_type=jnp.float32)
                     + b_ref[0])
        else:
            # merged [W_ih; W_hh] matmul on xh = [x | h_prev]  (one MXU issue)
            xh = jnp.concatenate([x, h_prev], axis=1).astype(mm_dtype)   # (B, 2H)
            gates = (jnp.dot(xh, wstk_ref[l - 1],
                             preferred_element_type=jnp.float32)
                     + b_ref[l])

        # single EUP pass over the full 4H tile: sigmoid(z) = 0.5*(tanh(z/2)+1)
        pre = jnp.where(is_g, gates, 0.5 * gates)
        th = jnp.tanh(pre)
        act = jnp.where(is_g, th, 0.5 * (th + 1.0))

        i_g = act[:, 0 * hid:1 * hid]
        f_g = act[:, 1 * hid:2 * hid]
        g_g = act[:, 2 * hid:3 * hid]
        o_g = act[:, 3 * hid:4 * hid]

        c_new = f_g * c_prev + i_g * g_g
        h_new = o_g * jnp.tanh(c_new)
        h_scr[l] = h_new
        c_scr[l] = c_new
        x = h_new                               # feed the next layer

    # final linear layer -> lane-padded (B, OUT_pad) logits for this step
    logits_ref[0] = (jnp.dot(x.astype(mm_dtype), fcw_ref[...],
                             preferred_element_type=jnp.float32)
                     + fcb_ref[...])

    # ---- emit the final state once, as a single lane-dense 128-wide slab
    @pl.when(t == pl.num_programs(0) - 1)
    def _():
        hc_out_ref[...] = jnp.concatenate(
            [h_scr[l] for l in range(num_layers)]
            + [c_scr[l] for l in range(num_layers)], axis=1)


# ---------------------------------------------------------------------------
# Hot path: one pallas_call for T steps.  Inputs are already padded/packed.
#   ids_p   : (T, B_pad, 1)  int32
#   hc_slab : (B_pad, 2*L*H) f32
# Returns (logits (T, B_pad, OUT_pad) f32, new hc_slab).
# ---------------------------------------------------------------------------
@jax.jit
def rnn_seq_padded(kparams, ids_p, hc_slab):
    T, b_pad, _ = ids_p.shape
    num_layers = kparams["b"].shape[0]
    hid = kparams["whh0"].shape[0]
    vocab = kparams["ew0"].shape[0]
    out_pad = kparams["fcw"].shape[1]
    slab_w = hc_slab.shape[1]
    lm1 = kparams["wstk"].shape[0]

    grid_spec = pltpu.PrefetchScalarGridSpec(
        num_scalar_prefetch=0,
        grid=(T,),
        in_specs=[
            pl.BlockSpec((1, b_pad, 1), lambda t: (t, 0, 0)),        # ids (per step)
            pl.BlockSpec((b_pad, slab_w), lambda t: (0, 0)),         # state slab in
            pl.BlockSpec((vocab, 4 * hid), lambda t: (0, 0)),        # E @ W_ih0^T
            pl.BlockSpec((hid, 4 * hid), lambda t: (0, 0)),          # W_hh0^T
            pl.BlockSpec((lm1, 2 * hid, 4 * hid), lambda t: (0, 0, 0)),  # merged l>=1
            pl.BlockSpec((num_layers, 1, 4 * hid), lambda t: (0, 0, 0)),  # biases
            pl.BlockSpec((hid, out_pad), lambda t: (0, 0)),          # fc W^T (padded)
            pl.BlockSpec((1, out_pad), lambda t: (0, 0)),            # fc bias (padded)
        ],
        out_specs=(
            pl.BlockSpec((1, b_pad, out_pad), lambda t: (t, 0, 0)),  # per-step logits
            pl.BlockSpec((b_pad, slab_w), lambda t: (0, 0)),         # final state slab
        ),
        scratch_shapes=[
            pltpu.VMEM((num_layers, b_pad, hid), jnp.float32),       # h scratch
            pltpu.VMEM((num_layers, b_pad, hid), jnp.float32),       # c scratch
        ],
    )

    logits, hc_new = pl.pallas_call(
        _fused_lstm_seq_kernel,
        grid_spec=grid_spec,
        out_shape=(jax.ShapeDtypeStruct((T, b_pad, out_pad), jnp.float32),
                   jax.ShapeDtypeStruct((b_pad, slab_w), jnp.float32)),
        compiler_params=pltpu.CompilerParams(
            # Sequential state-carrying time axis; intentionally NOT core-parallel
            # (v7x: 8 rows of work cannot be split across 2 TCs profitably).
            dimension_semantics=("arbitrary",)),
    )(ids_p, hc_slab, kparams["ew0"], kparams["whh0"], kparams["wstk"],
      kparams["b"], kparams["fcw"], kparams["fcb"])
    return logits, hc_new


# ---------------------------------------------------------------------------
# State packing helpers (run ONCE per sequence, not per step).
# ---------------------------------------------------------------------------
def pack_state(h, c, b_pad):
    num_layers, batch, hid = h.shape
    slab = jnp.zeros((b_pad, 2 * num_layers * hid), jnp.float32)
    slab = slab.at[:batch, :num_layers * hid].set(
        jnp.transpose(h, (1, 0, 2)).reshape(batch, num_layers * hid))
    slab = slab.at[:batch, num_layers * hid:].set(
        jnp.transpose(c, (1, 0, 2)).reshape(batch, num_layers * hid))
    return slab


def unpack_state(slab, batch, num_layers, hid):
    h = slab[:batch, :num_layers * hid].reshape(batch, num_layers, hid)
    c = slab[:batch, num_layers * hid:2 * num_layers * hid].reshape(batch, num_layers, hid)
    return jnp.transpose(h, (1, 0, 2)), jnp.transpose(c, (1, 0, 2))


# ---------------------------------------------------------------------------
# Module-equivalent single-step forward (matches torch RNN.forward).
# ---------------------------------------------------------------------------
def rnn_forward(kparams, x, h, c, *, out_size):
    num_layers, batch, hid = h.shape
    b_pad = _round_up(max(batch, 1), _SUBLANE)
    ids_p = jnp.zeros((1, b_pad, 1), jnp.int32).at[0, :batch, 0].set(x.astype(jnp.int32))
    slab = pack_state(h, c, b_pad)
    logits_p, slab_new = rnn_seq_padded(kparams, ids_p, slab)
    out = logits_p[0, :batch, :out_size]
    h_new, c_new = unpack_state(slab_new, batch, num_layers, hid)
    return out, (h_new, c_new)


# ---------------------------------------------------------------------------
# PyTorch-style parameter init (torch layout) and kernel-layout preparation.
# ---------------------------------------------------------------------------
def init_params(key, vocab_size, num_layers, hidden_size, output_size):
    k = 1.0 / float(np.sqrt(hidden_size))
    keys = iter(jax.random.split(key, 1 + 4 * num_layers + 2))
    params = {"embedding": jax.random.normal(next(keys), (vocab_size, hidden_size),
                                             dtype=jnp.float32)}     # N(0,1)
    w_ih, w_hh, b_ih, b_hh = [], [], [], []
    for _ in range(num_layers):
        w_ih.append(jax.random.uniform(next(keys), (4 * hidden_size, hidden_size),
                                       minval=-k, maxval=k, dtype=jnp.float32))
        w_hh.append(jax.random.uniform(next(keys), (4 * hidden_size, hidden_size),
                                       minval=-k, maxval=k, dtype=jnp.float32))
        b_ih.append(jax.random.uniform(next(keys), (4 * hidden_size,),
                                       minval=-k, maxval=k, dtype=jnp.float32))
        b_hh.append(jax.random.uniform(next(keys), (4 * hidden_size,),
                                       minval=-k, maxval=k, dtype=jnp.float32))
    params.update(w_ih=w_ih, w_hh=w_hh, b_ih=b_ih, b_hh=b_hh)
    params["fc_w"] = jax.random.uniform(next(keys), (output_size, hidden_size),
                                        minval=-k, maxval=k, dtype=jnp.float32)
    params["fc_b"] = jax.random.uniform(next(keys), (output_size,),
                                        minval=-k, maxval=k, dtype=jnp.float32)
    return params


def prepare_kernel_params(params, *, matmul_dtype=jnp.float32):
    """Fold / transpose / pad torch-layout weights into the kernel layout.

    Runs once on the host (float64), outside the hot path.  matmul_dtype may
    be jnp.bfloat16 on v6e/v7x; biases and all gate math stay f32.
    """
    E = np.asarray(params["embedding"], np.float64)                    # (V, H)
    num_layers = len(params["w_ih"])
    hidden = E.shape[1]
    ew0 = E @ np.asarray(params["w_ih"][0], np.float64).T              # (V, 4H)
    whh0 = np.asarray(params["w_hh"][0], np.float64).T                 # (H, 4H)
    if num_layers > 1:
        wstk = np.stack(
            [np.concatenate([np.asarray(params["w_ih"][l], np.float64).T,
                             np.asarray(params["w_hh"][l], np.float64).T], axis=0)
             for l in range(1, num_layers)], axis=0)                   # (L-1, 2H, 4H)
    else:
        wstk = np.zeros((1, 2 * hidden, 4 * hidden))                   # dummy, never read
    b_all = np.stack(
        [(np.asarray(params["b_ih"][l], np.float64)
          + np.asarray(params["b_hh"][l], np.float64))[None, :]
         for l in range(num_layers)], axis=0)                          # (L, 1, 4H)
    out_size = params["fc_w"].shape[0]
    out_pad = _round_up(out_size, _LANE)
    fcw = np.zeros((hidden, out_pad))
    fcw[:, :out_size] = np.asarray(params["fc_w"], np.float64).T
    fcb = np.zeros((1, out_pad))
    fcb[0, :out_size] = np.asarray(params["fc_b"], np.float64)
    return {
        "ew0": jnp.asarray(ew0, matmul_dtype),
        "whh0": jnp.asarray(whh0, matmul_dtype),
        "wstk": jnp.asarray(wstk, matmul_dtype),
        "b": jnp.asarray(b_all, jnp.float32),
        "fcw": jnp.asarray(fcw, matmul_dtype),
        "fcb": jnp.asarray(fcb, jnp.float32),
    }


# ---------------------------------------------------------------------------
# float64 numpy reference (torch forward run step-by-step, seq_len == 1 each).
# ---------------------------------------------------------------------------
def _sigmoid(x):
    return 1.0 / (1.0 + np.exp(-x))


def rnn_forward_ref_np(params, ids_seq, h0, c0):
    E = np.asarray(params["embedding"], np.float64)
    num_layers = len(params["w_ih"])
    hid = E.shape[1]
    W_ih = [np.asarray(w, np.float64) for w in params["w_ih"]]
    W_hh = [np.asarray(w, np.float64) for w in params["w_hh"]]
    b = [np.asarray(params["b_ih"][l], np.float64)
         + np.asarray(params["b_hh"][l], np.float64) for l in range(num_layers)]
    fc_w = np.asarray(params["fc_w"], np.float64)
    fc_b = np.asarray(params["fc_b"], np.float64)
    h = np.asarray(h0, np.float64).copy()
    c = np.asarray(c0, np.float64).copy()
    outs = []
    for t in range(ids_seq.shape[0]):
        x = E[np.asarray(ids_seq[t])]
        for l in range(num_layers):
            gates = x @ W_ih[l].T + h[l] @ W_hh[l].T + b[l]
            i = _sigmoid(gates[:, 0 * hid:1 * hid])
            f = _sigmoid(gates[:, 1 * hid:2 * hid])
            g = np.tanh(gates[:, 2 * hid:3 * hid])
            o = _sigmoid(gates[:, 3 * hid:4 * hid])
            c[l] = f * c[l] + i * g
            h[l] = o * np.tanh(c[l])
            x = h[l]
        outs.append(x @ fc_w.T + fc_b)
    return np.stack(outs, axis=0), h, c


# ---------------------------------------------------------------------------
if __name__ == "__main__":
    VOCAB, NUM_LAYERS, HIDDEN, OUTPUT, BATCH = 40, 2, 32, 40, 2
    B_PAD = _round_up(BATCH, _SUBLANE)

    key = jax.random.PRNGKey(0)
    pkey, xkey, skey = jax.random.split(key, 3)
    params = init_params(pkey, VOCAB, NUM_LAYERS, HIDDEN, OUTPUT)

    # ---------- exact f32 path (v5e default; also fine on v6e/v7x) ----------
    kparams = prepare_kernel_params(params, matmul_dtype=jnp.float32)

    x = jax.random.randint(xkey, (BATCH,), 0, VOCAB, dtype=jnp.int32)
    h0 = jnp.zeros((NUM_LAYERS, BATCH, HIDDEN), dtype=jnp.float32)
    c0 = jnp.zeros((NUM_LAYERS, BATCH, HIDDEN), dtype=jnp.float32)

    out, (h1, c1) = rnn_forward(kparams, x, h0, c0, out_size=OUTPUT)
    jax.block_until_ready((out, h1, c1))
    assert out.shape == (BATCH, OUTPUT)
    assert h1.shape == (NUM_LAYERS, BATCH, HIDDEN)
    assert c1.shape == (NUM_LAYERS, BATCH, HIDDEN)

    ref_out1, ref_h1, ref_c1 = rnn_forward_ref_np(
        params, np.asarray(x)[None, :], np.asarray(h0), np.asarray(c0))
    TOL = 2e-5   # tightened from 2e-3 (f32 kernel vs float64 reference)
    np.testing.assert_allclose(np.asarray(out), ref_out1[0], rtol=TOL, atol=TOL)
    np.testing.assert_allclose(np.asarray(h1), ref_h1, rtol=TOL, atol=TOL)
    np.testing.assert_allclose(np.asarray(c1), ref_c1, rtol=TOL, atol=TOL)

    # ---------- sequence path: T steps in ONE kernel call, padded state -----
    T = 6
    ids_seq = jax.random.randint(skey, (T, BATCH), 0, VOCAB, dtype=jnp.int32)
    ids_p = jnp.zeros((T, B_PAD, 1), jnp.int32).at[:, :BATCH, 0].set(ids_seq)
    slab0 = pack_state(h0, c0, B_PAD)
    logits_p, slab_T = rnn_seq_padded(kparams, ids_p, slab0)
    jax.block_until_ready((logits_p, slab_T))

    ref_outs, ref_hT, ref_cT = rnn_forward_ref_np(
        params, np.asarray(ids_seq), np.asarray(h0), np.asarray(c0))
    np.testing.assert_allclose(np.asarray(logits_p[:, :BATCH, :OUTPUT]), ref_outs,
                               rtol=TOL, atol=TOL)
    hT, cT = unpack_state(slab_T, BATCH, NUM_LAYERS, HIDDEN)
    np.testing.assert_allclose(np.asarray(hT), ref_hT, rtol=TOL, atol=TOL)
    np.testing.assert_allclose(np.asarray(cT), ref_cT, rtol=TOL, atol=TOL)

    # ---------- bf16 matmul-operand path (v6e / v7x); gate math stays f32 ---
    kparams_bf16 = prepare_kernel_params(params, matmul_dtype=jnp.bfloat16)
    out_bf, (h_bf, c_bf) = rnn_forward(kparams_bf16, x, h0, c0, out_size=OUTPUT)
    jax.block_until_ready((out_bf, h_bf, c_bf))
    np.testing.assert_allclose(np.asarray(out_bf), ref_out1[0], rtol=5e-2, atol=5e-2)

    print("KERNEL_OK")
</pallas_src>

<mosaic_0001>
module attributes {stable_mosaic.version = 11 : i64} {
  func.func @_fused_lstm_seq_kernel(%arg0: i32, %arg1: memref<1x8x1xi32, #tpu.memory_space<vmem>>, %arg2: memref<8x128xf32, #tpu.memory_space<vmem>>, %arg3: memref<40x128xf32, #tpu.memory_space<vmem>>, %arg4: memref<32x128xf32, #tpu.memory_space<vmem>>, %arg5: memref<1x64x128xf32, #tpu.memory_space<vmem>>, %arg6: memref<2x1x128xf32, #tpu.memory_space<vmem>>, %arg7: memref<32x128xf32, #tpu.memory_space<vmem>>, %arg8: memref<1x128xf32, #tpu.memory_space<vmem>>, %arg9: memref<1x8x128xf32, #tpu.memory_space<vmem>>, %arg10: memref<8x128xf32, #tpu.memory_space<vmem>>, %arg11: memref<2x8x32xf32, #tpu.memory_space<vmem>>, %arg12: memref<2x8x32xf32, #tpu.memory_space<vmem>>) attributes {dimension_semantics = [#tpu.dimension_semantics<arbitrary>], iteration_bounds = array<i64: 1>, scalar_prefetch = 0 : i64, scratch_operands = 2 : i64, tpu.core_type = #tpu.core_type<tc>, window_params = [{transform_indices = @transform_0, window_bounds = array<i64: 1, 8, 1>}, {pipeline_mode = #tpu.pipeline_mode<synchronous>, transform_indices = @transform_1, window_bounds = array<i64: 8, 128>}, {pipeline_mode = #tpu.pipeline_mode<synchronous>, transform_indices = @transform_2, window_bounds = array<i64: 40, 128>}, {pipeline_mode = #tpu.pipeline_mode<synchronous>, transform_indices = @transform_3, window_bounds = array<i64: 32, 128>}, {pipeline_mode = #tpu.pipeline_mode<synchronous>, transform_indices = @transform_4, window_bounds = array<i64: 1, 64, 128>}, {pipeline_mode = #tpu.pipeline_mode<synchronous>, transform_indices = @transform_5, window_bounds = array<i64: 2, 1, 128>}, {pipeline_mode = #tpu.pipeline_mode<synchronous>, transform_indices = @transform_6, window_bounds = array<i64: 32, 128>}, {pipeline_mode = #tpu.pipeline_mode<synchronous>, transform_indices = @transform_7, window_bounds = array<i64: 1, 128>}, {transform_indices = @transform_8, window_bounds = array<i64: 1, 8, 128>}, {pipeline_mode = #tpu.pipeline_mode<synchronous>, transform_indices = @transform_9, window_bounds = array<i64: 8, 128>}]} {
    %c0_i32 = arith.constant 0 : i32
    %0 = arith.cmpi eq, %arg0, %c0_i32 : i32
    %1 = arith.extui %0 : i1 to i32
    %c0_i32_0 = arith.constant 0 : i32
    %2 = arith.cmpi ne, %1, %c0_i32_0 : i32
    scf.if %2 {
      %c0_59 = arith.constant 0 : index
      %c0_60 = arith.constant 0 : index
      %101 = vector.load %arg2[%c0_59, %c0_60] : memref<8x128xf32, #tpu.memory_space<vmem>>, vector<8x128xf32>
      %102 = vector.extract_strided_slice %101 {offsets = [0, 0], sizes = [8, 32], strides = [1, 1]} : vector<8x128xf32> to vector<8x32xf32>
      %c0_61 = arith.constant 0 : index
      %c0_62 = arith.constant 0 : index
      %c0_63 = arith.constant 0 : index
      %103 = vector.load %arg11[%c0_61, %c0_62, %c0_63] : memref<2x8x32xf32, #tpu.memory_space<vmem>>, vector<1x8x32xf32>
      %104 = vector.shape_cast %103 : vector<1x8x32xf32> to vector<8x32xf32>
      %105 = vector.shape_cast %102 : vector<8x32xf32> to vector<1x8x32xf32>
      tpu.vector_store %arg11[%c0_61, %c0_62, %c0_63], %105 {strides = array<i32>} : memref<2x8x32xf32, #tpu.memory_space<vmem>>, vector<1x8x32xf32>,
      %106 = vector.extract_strided_slice %101 {offsets = [0, 64], sizes = [8, 32], strides = [1, 1]} : vector<8x128xf32> to vector<8x32xf32>
      %c0_64 = arith.constant 0 : index
      %c0_65 = arith.constant 0 : index
      %c0_66 = arith.constant 0 : index
      %107 = vector.load %arg12[%c0_64, %c0_65, %c0_66] : memref<2x8x32xf32, #tpu.memory_space<vmem>>, vector<1x8x32xf32>
      %108 = vector.shape_cast %107 : vector<1x8x32xf32> to vector<8x32xf32>
      %109 = vector.shape_cast %106 : vector<8x32xf32> to vector<1x8x32xf32>
      tpu.vector_store %arg12[%c0_64, %c0_65, %c0_66], %109 {strides = array<i32>} : memref<2x8x32xf32, #tpu.memory_space<vmem>>, vector<1x8x32xf32>,
      %110 = vector.extract_strided_slice %101 {offsets = [0, 32], sizes = [8, 32], strides = [1, 1]} : vector<8x128xf32> to vector<8x32xf32>
      %c1_67 = arith.constant 1 : index
      %c0_68 = arith.constant 0 : index
      %c0_69 = arith.constant 0 : index
      %111 = vector.load %arg11[%c1_67, %c0_68, %c0_69] : memref<2x8x32xf32, #tpu.memory_space<vmem>>, vector<1x8x32xf32>
      %112 = vector.shape_cast %111 : vector<1x8x32xf32> to vector<8x32xf32>
      %113 = vector.shape_cast %110 : vector<8x32xf32> to vector<1x8x32xf32>
      tpu.vector_store %arg11[%c1_67, %c0_68, %c0_69], %113 {strides = array<i32>} : memref<2x8x32xf32, #tpu.memory_space<vmem>>, vector<1x8x32xf32>,
      %114 = vector.extract_strided_slice %101 {offsets = [0, 96], sizes = [8, 32], strides = [1, 1]} : vector<8x128xf32> to vector<8x32xf32>
      %c1_70 = arith.constant 1 : index
      %c0_71 = arith.constant 0 : index
      %c0_72 = arith.constant 0 : index
      %115 = vector.load %arg12[%c1_70, %c0_71, %c0_72] : memref<2x8x32xf32, #tpu.memory_space<vmem>>, vector<1x8x32xf32>
      %116 = vector.shape_cast %115 : vector<1x8x32xf32> to vector<8x32xf32>
      %117 = vector.shape_cast %114 : vector<8x32xf32> to vector<1x8x32xf32>
      tpu.vector_store %arg12[%c1_70, %c0_71, %c0_72], %117 {strides = array<i32>} : memref<2x8x32xf32, #tpu.memory_space<vmem>>, vector<1x8x32xf32>,
    } else {
    }
    %c0 = arith.constant 0 : index
    %c0_1 = arith.constant 0 : index
    %c0_2 = arith.constant 0 : index
    %3 = vector.load %arg1[%c0, %c0_1, %c0_2] : memref<1x8x1xi32, #tpu.memory_space<vmem>>, vector<1x8x1xi32>
    %4 = vector.shape_cast %3 : vector<1x8x1xi32> to vector<8x1xi32>
    %5 = tpu.iota {dimensions = array<i32: 1>} : vector<8x40xi32>
    %6 = vector.broadcast %4 : vector<8x1xi32> to vector<8x40xi32>
    %7 = arith.cmpi eq, %5, %6 : vector<8x40xi32>
    %cst = arith.constant 1.000000e+00 : f32
    %cst_3 = arith.constant 0.000000e+00 : f32
    %8 = vector.broadcast %cst : f32 to vector<8x40xf32>
    %9 = vector.broadcast %cst_3 : f32 to vector<8x40xf32>
    %10 = arith.select %7, %8, %9 : vector<8x40xi1>, vector<8x40xf32>
    %11 = tpu.iota {dimensions = array<i32: 1>} : vector<8x128xi32>
    %c64_i32 = arith.constant 64 : i32
    %12 = vector.broadcast %c64_i32 : i32 to vector<8x128xi32>
    %13 = arith.cmpi sge, %11, %12 : vector<8x128xi32>
    %c96_i32 = arith.constant 96 : i32
    %14 = vector.broadcast %c96_i32 : i32 to vector<8x128xi32>
    %15 = arith.cmpi slt, %11, %14 : vector<8x128xi32>
    %16 = arith.andi %13, %15 : vector<8x128xi1>
    %c0_4 = arith.constant 0 : index
    %c0_5 = arith.constant 0 : index
    %c0_6 = arith.constant 0 : index
    %17 = vector.load %arg11[%c0_4, %c0_5, %c0_6] : memref<2x8x32xf32, #tpu.memory_space<vmem>>, vector<1x8x32xf32>
    %18 = vector.shape_cast %17 : vector<1x8x32xf32> to vector<8x32xf32>
    %c0_7 = arith.constant 0 : index
    %c0_8 = arith.constant 0 : index
    %c0_9 = arith.constant 0 : index
    %19 = vector.load %arg12[%c0_7, %c0_8, %c0_9] : memref<2x8x32xf32, #tpu.memory_space<vmem>>, vector<1x8x32xf32>
    %20 = vector.shape_cast %19 : vector<1x8x32xf32> to vector<8x32xf32>
    %c0_10 = arith.constant 0 : index
    %c0_11 = arith.constant 0 : index
    %21 = vector.load %arg3[%c0_10, %c0_11] : memref<40x128xf32, #tpu.memory_space<vmem>>, vector<40x128xf32>
    %cst_12 = arith.constant dense<0.000000e+00> : vector<8x128xf32>
    %22 = tpu.matmul %10, %21, %cst_12 {dimension_numbers = #tpu.dot_dimension_numbers<[1], [0], [0], [1], [0, 0, 1, 1], [], []>} : vector<8x40xf32>, vector<40x128xf32>, vector<8x128xf32> -> vector<8x128xf32>
    %c0_13 = arith.constant 0 : index
    %c0_14 = arith.constant 0 : index
    %23 = vector.load %arg4[%c0_13, %c0_14] : memref<32x128xf32, #tpu.memory_space<vmem>>, vector<32x128xf32>
    %cst_15 = arith.constant dense<0.000000e+00> : vector<8x128xf32>
    %24 = tpu.matmul %18, %23, %cst_15 {dimension_numbers = #tpu.dot_dimension_numbers<[1], [0], [0], [1], [0, 0, 1, 1], [], []>} : vector<8x32xf32>, vector<32x128xf32>, vector<8x128xf32> -> vector<8x128xf32>
    %25 = arith.addf %22, %24 : vector<8x128xf32>
    %c0_16 = arith.constant 0 : index
    %c0_17 = arith.constant 0 : index
    %c0_18 = arith.constant 0 : index
    %26 = vector.load %arg6[%c0_16, %c0_17, %c0_18] : memref<2x1x128xf32, #tpu.memory_space<vmem>>, vector<1x1x128xf32>
    %27 = vector.shape_cast %26 : vector<1x1x128xf32> to vector<1x128xf32>
    %28 = vector.broadcast %27 : vector<1x128xf32> to vector<8x128xf32>
    %29 = arith.addf %25, %28 : vector<8x128xf32>
    %cst_19 = arith.constant 5.000000e-01 : f32
    %30 = vector.broadcast %cst_19 : f32 to vector<8x128xf32>
    %31 = arith.mulf %30, %29 : vector<8x128xf32>
    %32 = arith.select %16, %29, %31 : vector<8x128xi1>, vector<8x128xf32>
    %33 = math.tanh %32 : vector<8x128xf32>
    %cst_20 = arith.constant 1.000000e+00 : f32
    %34 = vector.broadcast %cst_20 : f32 to vector<8x128xf32>
    %35 = arith.addf %33, %34 : vector<8x128xf32>
    %cst_21 = arith.constant 5.000000e-01 : f32
    %36 = vector.broadcast %cst_21 : f32 to vector<8x128xf32>
    %37 = arith.mulf %36, %35 : vector<8x128xf32>
    %38 = arith.select %16, %33, %37 : vector<8x128xi1>, vector<8x128xf32>
    %39 = vector.extract_strided_slice %38 {offsets = [0, 0], sizes = [8, 32], strides = [1, 1]} : vector<8x128xf32> to vector<8x32xf32>
    %40 = vector.extract_strided_slice %38 {offsets = [0, 32], sizes = [8, 32], strides = [1, 1]} : vector<8x128xf32> to vector<8x32xf32>
    %41 = vector.extract_strided_slice %38 {offsets = [0, 64], sizes = [8, 32], strides = [1, 1]} : vector<8x128xf32> to vector<8x32xf32>
    %42 = vector.extract_strided_slice %38 {offsets = [0, 96], sizes = [8, 32], strides = [1, 1]} : vector<8x128xf32> to vector<8x32xf32>
    %43 = arith.mulf %40, %20 : vector<8x32xf32>
    %44 = arith.mulf %39, %41 : vector<8x32xf32>
    %45 = arith.addf %43, %44 : vector<8x32xf32>
    %46 = math.tanh %45 : vector<8x32xf32>
    %47 = arith.mulf %42, %46 : vector<8x32xf32>
    %c0_22 = arith.constant 0 : index
    %c0_23 = arith.constant 0 : index
    %c0_24 = arith.constant 0 : index
    %48 = vector.load %arg11[%c0_22, %c0_23, %c0_24] : memref<2x8x32xf32, #tpu.memory_space<vmem>>, vector<1x8x32xf32>
    %49 = vector.shape_cast %48 : vector<1x8x32xf32> to vector<8x32xf32>
    %50 = vector.shape_cast %47 : vector<8x32xf32> to vector<1x8x32xf32>
    tpu.vector_store %arg11[%c0_22, %c0_23, %c0_24], %50 {strides = array<i32>} : memref<2x8x32xf32, #tpu.memory_space<vmem>>, vector<1x8x32xf32>,
    %c0_25 = arith.constant 0 : index
    %c0_26 = arith.constant 0 : index
    %c0_27 = arith.constant 0 : index
    %51 = vector.load %arg12[%c0_25, %c0_26, %c0_27] : memref<2x8x32xf32, #tpu.memory_space<vmem>>, vector<1x8x32xf32>
    %52 = vector.shape_cast %51 : vector<1x8x32xf32> to vector<8x32xf32>
    %53 = vector.shape_cast %45 : vector<8x32xf32> to vector<1x8x32xf32>
    tpu.vector_store %arg12[%c0_25, %c0_26, %c0_27], %53 {strides = array<i32>} : memref<2x8x32xf32, #tpu.memory_space<vmem>>, vector<1x8x32xf32>,
    %c1 = arith.constant 1 : index
    %c0_28 = arith.constant 0 : index
    %c0_29 = arith.constant 0 : index
    %54 = vector.load %arg11[%c1, %c0_28, %c0_29] : memref<2x8x32xf32, #tpu.memory_space<vmem>>, vector<1x8x32xf32>
    %55 = vector.shape_cast %54 : vector<1x8x32xf32> to vector<8x32xf32>
    %c1_30 = arith.constant 1 : index
    %c0_31 = arith.constant 0 : index
    %c0_32 = arith.constant 0 : index
    %56 = vector.load %arg12[%c1_30, %c0_31, %c0_32] : memref<2x8x32xf32, #tpu.memory_space<vmem>>, vector<1x8x32xf32>
    %57 = vector.shape_cast %56 : vector<1x8x32xf32> to vector<8x32xf32>
    %58 = tpu.concatenate %47, %55 in 1 : vector<8x32xf32>, vector<8x32xf32> -> vector<8x64xf32>
    %c0_33 = arith.constant 0 : index
    %c0_34 = arith.constant 0 : index
    %c0_35 = arith.constant 0 : index
    %59 = vector.load %arg5[%c0_33, %c0_34, %c0_35] : memref<1x64x128xf32, #tpu.memory_space<vmem>>, vector<1x64x128xf32>
    %60 = vector.shape_cast %59 : vector<1x64x128xf32> to vector<64x128xf32>
    %cst_36 = arith.constant dense<0.000000e+00> : vector<8x128xf32>
    %61 = tpu.matmul %58, %60, %cst_36 {dimension_numbers = #tpu.dot_dimension_numbers<[1], [0], [0], [1], [0, 0, 1, 1], [], []>} : vector<8x64xf32>, vector<64x128xf32>, vector<8x128xf32> -> vector<8x128xf32>
    %c1_37 = arith.constant 1 : index
    %c0_38 = arith.constant 0 : index
    %c0_39 = arith.constant 0 : index
    %62 = vector.load %arg6[%c1_37, %c0_38, %c0_39] : memref<2x1x128xf32, #tpu.memory_space<vmem>>, vector<1x1x128xf32>
    %63 = vector.shape_cast %62 : vector<1x1x128xf32> to vector<1x128xf32>
    %64 = vector.broadcast %63 : vector<1x128xf32> to vector<8x128xf32>
    %65 = arith.addf %61, %64 : vector<8x128xf32>
    %cst_40 = arith.constant 5.000000e-01 : f32
    %66 = vector.broadcast %cst_40 : f32 to vector<8x128xf32>
    %67 = arith.mulf %66, %65 : vector<8x128xf32>
    %68 = arith.select %16, %65, %67 : vector<8x128xi1>, vector<8x128xf32>
    %69 = math.tanh %68 : vector<8x128xf32>
    %cst_41 = arith.constant 1.000000e+00 : f32
    %70 = vector.broadcast %cst_41 : f32 to vector<8x128xf32>
    %71 = arith.addf %69, %70 : vector<8x128xf32>
    %cst_42 = arith.constant 5.000000e-01 : f32
    %72 = vector.broadcast %cst_42 : f32 to vector<8x128xf32>
    %73 = arith.mulf %72, %71 : vector<8x128xf32>
    %74 = arith.select %16, %69, %73 : vector<8x128xi1>, vector<8x128xf32>
    %75 = vector.extract_strided_slice %74 {offsets = [0, 0], sizes = [8, 32], strides = [1, 1]} : vector<8x128xf32> to vector<8x32xf32>
    %76 = vector.extract_strided_slice %74 {offsets = [0, 32], sizes = [8, 32], strides = [1, 1]} : vector<8x128xf32> to vector<8x32xf32>
    %77 = vector.extract_strided_slice %74 {offsets = [0, 64], sizes = [8, 32], strides = [1, 1]} : vector<8x128xf32> to vector<8x32xf32>
    %78 = vector.extract_strided_slice %74 {offsets = [0, 96], sizes = [8, 32], strides = [1, 1]} : vector<8x128xf32> to vector<8x32xf32>
    %79 = arith.mulf %76, %57 : vector<8x32xf32>
    %80 = arith.mulf %75, %77 : vector<8x32xf32>
    %81 = arith.addf %79, %80 : vector<8x32xf32>
    %82 = math.tanh %81 : vector<8x32xf32>
    %83 = arith.mulf %78, %82 : vector<8x32xf32>
    %c1_43 = arith.constant 1 : index
    %c0_44 = arith.constant 0 : index
    %c0_45 = arith.constant 0 : index
    %84 = vector.load %arg11[%c1_43, %c0_44, %c0_45] : memref<2x8x32xf32, #tpu.memory_space<vmem>>, vector<1x8x32xf32>
    %85 = vector.shape_cast %84 : vector<1x8x32xf32> to vector<8x32xf32>
    %86 = vector.shape_cast %83 : vector<8x32xf32> to vector<1x8x32xf32>
    tpu.vector_store %arg11[%c1_43, %c0_44, %c0_45], %86 {strides = array<i32>} : memref<2x8x32xf32, #tpu.memory_space<vmem>>, vector<1x8x32xf32>,
    %c1_46 = arith.constant 1 : index
    %c0_47 = arith.constant 0 : index
    %c0_48 = arith.constant 0 : index
    %87 = vector.load %arg12[%c1_46, %c0_47, %c0_48] : memref<2x8x32xf32, #tpu.memory_space<vmem>>, vector<1x8x32xf32>
    %88 = vector.shape_cast %87 : vector<1x8x32xf32> to vector<8x32xf32>
    %89 = vector.shape_cast %81 : vector<8x32xf32> to vector<1x8x32xf32>
    tpu.vector_store %arg12[%c1_46, %c0_47, %c0_48], %89 {strides = array<i32>} : memref<2x8x32xf32, #tpu.memory_space<vmem>>, vector<1x8x32xf32>,
    %c0_49 = arith.constant 0 : index
    %c0_50 = arith.constant 0 : index
    %90 = vector.load %arg7[%c0_49, %c0_50] : memref<32x128xf32, #tpu.memory_space<vmem>>, vector<32x128xf32>
    %cst_51 = arith.constant dense<0.000000e+00> : vector<8x128xf32>
    %91 = tpu.matmul %83, %90, %cst_51 {dimension_numbers = #tpu.dot_dimension_numbers<[1], [0], [0], [1], [0, 0, 1, 1], [], []>} : vector<8x32xf32>, vector<32x128xf32>, vector<8x128xf32> -> vector<8x128xf32>
    %c0_52 = arith.constant 0 : index
    %c0_53 = arith.constant 0 : index
    %92 = vector.load %arg8[%c0_52, %c0_53] : memref<1x128xf32, #tpu.memory_space<vmem>>, vector<1x128xf32>
    %93 = vector.broadcast %92 : vector<1x128xf32> to vector<8x128xf32>
    %94 = arith.addf %91, %93 : vector<8x128xf32>
    %c0_54 = arith.constant 0 : index
    %c0_55 = arith.constant 0 : index
    %c0_56 = arith.constant 0 : index
    %95 = vector.load %arg9[%c0_54, %c0_55, %c0_56] : memref<1x8x128xf32, #tpu.memory_space<vmem>>, vector<1x8x128xf32>
    %96 = vector.shape_cast %95 : vector<1x8x128xf32> to vector<8x128xf32>
    %97 = vector.shape_cast %94 : vector<8x128xf32> to vector<1x8x128xf32>
    tpu.vector_store %arg9[%c0_54, %c0_55, %c0_56], %97 {strides = array<i32>} : memref<1x8x128xf32, #tpu.memory_space<vmem>>, vector<1x8x128xf32>,
    %c0_i32_57 = arith.constant 0 : i32
    %98 = arith.cmpi eq, %arg0, %c0_i32_57 : i32
    %99 = arith.extui %98 : i1 to i32
    %c0_i32_58 = arith.constant 0 : i32
    %100 = arith.cmpi ne, %99, %c0_i32_58 : i32
    scf.if %100 {
      %c0_59 = arith.constant 0 : index
      %c0_60 = arith.constant 0 : index
      %c0_61 = arith.constant 0 : index
      %101 = vector.load %arg11[%c0_59, %c0_60, %c0_61] : memref<2x8x32xf32, #tpu.memory_space<vmem>>, vector<1x8x32xf32>
      %102 = vector.shape_cast %101 : vector<1x8x32xf32> to vector<8x32xf32>
      %c1_62 = arith.constant 1 : index
      %c0_63 = arith.constant 0 : index
      %c0_64 = arith.constant 0 : index
      %103 = vector.load %arg11[%c1_62, %c0_63, %c0_64] : memref<2x8x32xf32, #tpu.memory_space<vmem>>, vector<1x8x32xf32>
      %104 = vector.shape_cast %103 : vector<1x8x32xf32> to vector<8x32xf32>
      %c0_65 = arith.constant 0 : index
      %c0_66 = arith.constant 0 : index
      %c0_67 = arith.constant 0 : index
      %105 = vector.load %arg12[%c0_65, %c0_66, %c0_67] : memref<2x8x32xf32, #tpu.memory_space<vmem>>, vector<1x8x32xf32>
      %106 = vector.shape_cast %105 : vector<1x8x32xf32> to vector<8x32xf32>
      %c1_68 = arith.constant 1 : index
      %c0_69 = arith.constant 0 : index
      %c0_70 = arith.constant 0 : index
      %107 = vector.load %arg12[%c1_68, %c0_69, %c0_70] : memref<2x8x32xf32, #tpu.memory_space<vmem>>, vector<1x8x32xf32>
      %108 = vector.shape_cast %107 : vector<1x8x32xf32> to vector<8x32xf32>
      %109 = tpu.concatenate %102, %104, %106, %108 in 1 : vector<8x32xf32>, vector<8x32xf32>, vector<8x32xf32>, vector<8x32xf32> -> vector<8x128xf32>
      %c0_71 = arith.constant 0 : index
      %c0_72 = arith.constant 0 : index
      %110 = vector.load %arg10[%c0_71, %c0_72] : memref<8x128xf32, #tpu.memory_space<vmem>>, vector<8x128xf32>
      tpu.vector_store %arg10[%c0_71, %c0_72], %109 {strides = array<i32>} : memref<8x128xf32, #tpu.memory_space<vmem>>, vector<8x128xf32>,
    } else {
    }
    return
  }
  func.func @transform_0(%arg0: i32) -> (i32, i32, i32) {
    %c0_i32 = arith.constant 0 : i32
    %c0_i32_0 = arith.constant 0 : i32
    %c0_i32_1 = arith.constant 0 : i32
    return %arg0, %c0_i32, %c0_i32_0 : i32, i32, i32
  }
  func.func @transform_1(%arg0: i32) -> (i32, i32) {
    %c0_i32 = arith.constant 0 : i32
    %c0_i32_0 = arith.constant 0 : i32
    %c0_i32_1 = arith.constant 0 : i32
    return %c0_i32, %c0_i32_0 : i32, i32
  }
  func.func @transform_2(%arg0: i32) -> (i32, i32) {
    %c0_i32 = arith.constant 0 : i32
    %c0_i32_0 = arith.constant 0 : i32
    %c0_i32_1 = arith.constant 0 : i32
    return %c0_i32, %c0_i32_0 : i32, i32
  }
  func.func @transform_3(%arg0: i32) -> (i32, i32) {
    %c0_i32 = arith.constant 0 : i32
    %c0_i32_0 = arith.constant 0 : i32
    %c0_i32_1 = arith.constant 0 : i32
    return %c0_i32, %c0_i32_0 : i32, i32
  }
  func.func @transform_4(%arg0: i32) -> (i32, i32, i32) {
    %c0_i32 = arith.constant 0 : i32
    %c0_i32_0 = arith.constant 0 : i32
    %c0_i32_1 = arith.constant 0 : i32
    %c0_i32_2 = arith.constant 0 : i32
    return %c0_i32, %c0_i32_0, %c0_i32_1 : i32, i32, i32
  }
  func.func @transform_5(%arg0: i32) -> (i32, i32, i32) {
    %c0_i32 = arith.constant 0 : i32
    %c0_i32_0 = arith.constant 0 : i32
    %c0_i32_1 = arith.constant 0 : i32
    %c0_i32_2 = arith.constant 0 : i32
    return %c0_i32, %c0_i32_0, %c0_i32_1 : i32, i32, i32
  }
  func.func @transform_6(%arg0: i32) -> (i32, i32) {
    %c0_i32 = arith.constant 0 : i32
    %c0_i32_0 = arith.constant 0 : i32
    %c0_i32_1 = arith.constant 0 : i32
    return %c0_i32, %c0_i32_0 : i32, i32
  }
  func.func @transform_7(%arg0: i32) -> (i32, i32) {
    %c0_i32 = arith.constant 0 : i32
    %c0_i32_0 = arith.constant 0 : i32
    %c0_i32_1 = arith.constant 0 : i32
    return %c0_i32, %c0_i32_0 : i32, i32
  }
  func.func @transform_8(%arg0: i32) -> (i32, i32, i32) {
    %c0_i32 = arith.constant 0 : i32
    %c0_i32_0 = arith.constant 0 : i32
    %c0_i32_1 = arith.constant 0 : i32
    return %arg0, %c0_i32, %c0_i32_0 : i32, i32, i32
  }
  func.func @transform_9(%arg0: i32) -> (i32, i32) {
    %c0_i32 = arith.constant 0 : i32
    %c0_i32_0 = arith.constant 0 : i32
    %c0_i32_1 = arith.constant 0 : i32
    return %c0_i32, %c0_i32_0 : i32, i32
  }
}

</mosaic_0001>

<bundles_post_ra>
// kernel: rnn_seq_padded.1
= control target key start
LH: loop header
LB: loop body
LE: loop exit
PB: predicated region body
PF: predicated region fallthrough
CT: control target
= control target key end

     0   :  { %15 = vsyncpa [#allocation5], 0  ;;  %s1130_s0 = inlined_call_operand.vmem [shape: s32[1,8,1], index: 0, kind: input, shape index: {}]   ;;  %s1131_s1 = inlined_call_operand.vmem [shape: f32[8,128], index: 1, kind: input, shape index: {}]   ;;  %s1132_s2 = inlined_call_operand.hbm [shape: f32[40,128], index: 2, kind: input, shape index: {}]   ;;  %s1133_s3 = inlined_call_operand.hbm [shape: f32[32,128], index: 3, kind: input, shape index: {}]   ;;  %s1134_s4 = inlined_call_operand.hbm [shape: f32[1,64,128], index: 4, kind: input, shape index: {}]   ;;  %s1135_s5 = inlined_call_operand.vmem [shape: f32[2,1,128], index: 5, kind: input, shape index: {}]   ;;  %s1136_s6 = inlined_call_operand.hbm [shape: f32[32,128], index: 6, kind: input, shape index: {}]   ;;  %s1137_s7 = inlined_call_operand.vmem [shape: f32[1,128], index: 7, kind: input, shape index: {}]   ;;  %s1138_s8 = inlined_call_operand.hbm [shape: f32[1,8,128], index: 8, kind: output, shape index: {0}]   ;;  %s1139_s9 = inlined_call_operand.hbm [shape: f32[8,128], index: 9, kind: output, shape index: {1}]  }
   0x1   :  { %16 = vsyncpa [#allocation8], 0 }
   0x2   :  { %17 = vsyncpa [#allocation11], 0 }
   0x3   :  { %18 = vsyncpa [#allocation6], 0 }
   0x4   :  { %19 = vsyncpa [#allocation14], 0  ;;  %s883_s30 = smov [#allocation7]   ;;  %s884_s11 = smov [#allocation4]  }
   0x5   :  { %s41_s10 = sshll.u32 %s883_s30, 4  ;;  %s29_s12 = sshll.u32 %s884_s11, 4  ;;  %s42_s10 = int_to_ptr.vmem [resolvable:$true] %s41_s10  ;;  %s948_s12 = int_to_ptr.vmem [resolvable:$true] %s29_s12 }
   0x6   :  { %s741_s15 = scalar_lea.hbm %s1133_s3, 512 }
   0x7   :  { %p742_p0 = scmp.ne.s32.totalorder %s1133_s3, %s741_s15  ;;  %p745_p1 = scmp.lt.u32.totalorder %s741_s15, %s1133_s3 }
   0x9   :  { %p747_p2 = pnand %p745_p1, %p742_p0 }
   0xb   :  { %750 = shalt.err (!%p747_p2)
}
   0xc   :  { %s751_s20 = scalar_lea.vmem %s42_s10, 512  ;;  %p756_p4 = scmp.lt.s32.totalorder %s42_s10, %s42_s10 }
   0xd   :  { %p752_p3 = scmp.ne.s32.totalorder %s42_s10, %s751_s20  ;;  %p757_p5 = scmp.lt.s32.totalorder %s751_s20, %s751_s20 }
   0xf   :  { %p758_p6 = por %p757_p5, %p756_p4 }
  0x11   :  { %p759_p7 = pnand %p758_p6, %p752_p3 }
  0x13   :  { %762 = shalt.err (!%p759_p7)
}
  0x14   :  { %s885_s21 = smov 128   ;;  %s886_s22 = smov 8  }
  0x15   :  { %47 = dma.hbm_to_vmem [thread:$0]  %s1133_s3, 512, %s42_s10, [#allocation8], %s885_s21, %s885_s21, %s886_s22  }
  0x16   :  { %s763_s27 = scalar_lea.hbm %s1132_s2, 640 }
  0x17   :  { %p764_p8 = scmp.ne.s32.totalorder %s1132_s2, %s763_s27  ;;  %p767_p9 = scmp.lt.u32.totalorder %s763_s27, %s1132_s2 }
  0x19   :  { %p769_p10 = pnand %p767_p9, %p764_p8 }
  0x1b   :  { %772 = shalt.err (!%p769_p10)
}
  0x1c   :  { %s773_s13 = scalar_lea.vmem %s948_s12, 640  ;;  %p778_p12 = scmp.lt.s32.totalorder %s948_s12, %s948_s12 }
  0x1d   :  { %p774_p11 = scmp.ne.s32.totalorder %s948_s12, %s773_s13  ;;  %p779_p13 = scmp.lt.s32.totalorder %s773_s13, %s773_s13 }
  0x1f   :  { %p780_p0 = por %p779_p13, %p778_p12 }
  0x21   :  { %p781_p1 = pnand %p780_p0, %p774_p11 }
  0x23   :  { %784 = shalt.err (!%p781_p1)
}
  0x24   :  { %35 = dma.hbm_to_vmem [thread:$0]  %s1132_s2, 640, %s948_s12, [#allocation5], %s885_s21, %s885_s21, %s886_s22  }
  0x25   :  { %s887_s14 = smov [#allocation9]   ;;  %s888_s16 = smov [#allocation10]  }
  0x26   :  { %s53_s15 = sshll.u32 %s887_s14, 4  ;;  %s67_s17 = sshll.u32 %s888_s16, 4  ;;  %s54_s15 = int_to_ptr.vmem [resolvable:$true] %s53_s15  ;;  %s985_s17 = int_to_ptr.vmem [resolvable:$true] %s67_s17 }
  0x27   :  { %s785_s20 = scalar_lea.hbm %s1134_s4, 1024 }
  0x28   :  { %p786_p2 = scmp.ne.s32.totalorder %s1134_s4, %s785_s20  ;;  %p789_p3 = scmp.lt.u32.totalorder %s785_s20, %s1134_s4 }
  0x2a   :  { %p791_p4 = pnand %p789_p3, %p786_p2 }
  0x2c   :  { %794 = shalt.err (!%p791_p4)
}
  0x2d   :  { %s795_s2 = scalar_lea.vmem %s54_s15, 1024  ;;  %p800_p6 = scmp.lt.s32.totalorder %s54_s15, %s54_s15 }
  0x2e   :  { %p796_p5 = scmp.ne.s32.totalorder %s54_s15, %s795_s2  ;;  %p801_p7 = scmp.lt.s32.totalorder %s795_s2, %s795_s2 }
  0x30   :  { %p802_p8 = por %p801_p7, %p800_p6 }
  0x32   :  { %p803_p9 = pnand %p802_p8, %p796_p5 }
  0x34   :  { %806 = shalt.err (!%p803_p9)
}
  0x35   :  { %59 = dma.hbm_to_vmem [thread:$0]  %s1134_s4, 1024, %s54_s15, [#allocation8], %s885_s21, %s885_s21, %s886_s22  }
  0x36   :  { %s807_s30 = scalar_lea.hbm %s1136_s6, 512 }
  0x37   :  { %p808_p10 = scmp.ne.s32.totalorder %s1136_s6, %s807_s30  ;;  %p811_p11 = scmp.lt.u32.totalorder %s807_s30, %s1136_s6 }
  0x39   :  { %p813_p12 = pnand %p811_p11, %p808_p10 }
  0x3b   :  { %816 = shalt.err (!%p813_p12)
}
  0x3c   :  { %s817_s14 = scalar_lea.vmem %s985_s17, 512  ;;  %p822_p0 = scmp.lt.s32.totalorder %s985_s17, %s985_s17 }
  0x3d   :  { %p818_p13 = scmp.ne.s32.totalorder %s985_s17, %s817_s14  ;;  %p823_p1 = scmp.lt.s32.totalorder %s817_s14, %s817_s14 }
  0x3f   :  { %p824_p2 = por %p823_p1, %p822_p0 }
  0x41   :  { %p825_p3 = pnand %p824_p2, %p818_p13 }
  0x43   :  { %828 = shalt.err (!%p825_p3)
}
  0x44   :  { %73 = dma.hbm_to_vmem [thread:$0]  %s1136_s6, 512, %s985_s17, [#allocation11], %s885_s21, %s885_s21, %s886_s22  }
  0x45   :  { %873 = dma.done.wait [#allocation5], 640  }
  0x46   :  { %874 = vsyncadd [#allocation5], 4294966656 }
  0x47   :  { %875 = dma.done.wait [#allocation8], 1536  }
  0x48   :  { %876 = vsyncadd [#allocation8], 4294965760 }
  0x49   :  { %877 = dma.done.wait [#allocation11], 512  }
  0x4a   :  { %878 = vsyncadd [#allocation11], 4294966784  ;;  %v889_v0 = vmov 0   ;;  %v890_v1 = vmov 0.0|0.0   ;;  %v110_v2 = vld [vmem:[%s1130_s0] sm:$0xff]  ;;  %v124_v4 = vld [vmem:[#allocation4 + $0x8] sm:$0xff]  ;;  %v111_v19 = vlaneseq }
  0x4b   :  { %732 = vset.pattern.permute.xlu0 %v889_v0  ;;  %693 = vmatprep.subr.bf16.mxu1 %v890_v1  ;;  %v123_v3 = vld [vmem:[#allocation4] sm:$0xff]  ;;  %v128_v6 = vld [vmem:[#allocation7] sm:$0xff]  ;;  %v129_v7 = vld [vmem:[#allocation7 + $0x8] sm:$0xff]  ;;  %vm891_vm0 = vmmov 0   ;;  %v892_v9 = vmov 0.0   ;;  %vm93_vm1 = vcmask 261120  }
  0x4c   :  { %687 = vmatprep.subr.bf16.mxu0 %v890_v1  ;;  %114 = vperm.xlu0 %732, %v110_v2   ;;  %v694_v5 = vpack.c.bf16 %v124_v4, %v123_v3  ;;  %v125_v8 = vld [vmem:[#allocation4 + $0x10] sm:$0xff]  ;;  %v688_v10 = vpack.c.bf16 %v129_v7, %v128_v6  ;;  %v126_v11 = vld [vmem:[#allocation4 + $0x18] sm:$0xff]  ;;  %v131_v13 = vld [vmem:[#allocation7 + $0x18] sm:$0xff]  ;;  %s893_s21 = smov 64   ;;  %v112_v20 = vand.u32 127, %v111_v19  ;;  %vm206_vm2 = vcmask 326656  }
  0x4d   :  { %641 = vmatprep.mubr.msk.f32.mxu0 %vm891_vm0, %v892_v9  ;;  %v130_v12 = vld [vmem:[#allocation7 + $0x10] sm:$0xff]  ;;  %654 = vmatprep.mubr.msk.f32.mxu1 %vm891_vm0, %v892_v9  ;;  %v697_v14 = vpack.c.bf16 %v126_v11, %v125_v8  ;;  %v1032_v15 = vld [vmem:[%s1131_s1] sm:$0xff]  ;;  %s894_s17 = smov 32   ;;  %s895_s19 = smov 96   ;;  %v334_v46 = vld [vmem:[#allocation9] sm:$0xff]  ;;  %vm350_vm7 = vcmask 523264  }
  0x4e   :  { %695 = vmatpush3.bf16.msra.mxu1 %v694_v5  ;;  %689 = vmatpush3.bf16.msra.mxu0 %v688_v10  ;;  %v691_v16 = vpack.c.bf16 %v131_v13, %v130_v12  ;;  %94 = vst.msk [vmem:[#allocation2] sm:$0xff] %vm93_vm1, %v1032_v15  ;;  %v127_v17 = vld [vmem:[#allocation4 + $0x20] sm:$0xff]  ;;  %vm118_vm4 = vcmp.ge.s32.totalorder %v112_v20, 64  ;;  %vm119_vm5 = vcmp.lt.s32.totalorder %v112_v20, 96  ;;  %v335_v47 = vld [vmem:[#allocation9 + $0x8] sm:$0xff]  ;;  %v336_v48 = vld [vmem:[#allocation9 + $0x10] sm:$0xff] }
  0x4f   :  { %696 = vmatprep.subr.bf16.mxu1 %v890_v1  ;;  %690 = vmatprep.subr.bf16.mxu0 %v890_v1  ;;  %v602_v27 = vld [vmem:[%s1135_s5] ss:$0 sm:$0xff]  ;;  %vm1049_vm6 = vmand %vm118_vm4, %vm119_vm5  ;;  %v700_v49 = vpack.c.bf16 %v335_v47, %v334_v46  ;;  %v338_v52 = vld [vmem:[#allocation9 + $0x20] sm:$0xff]  ;;  %vm566_vm8 = vcmask 785408  }
  0x50   :  { %96 = vrot.lane.b32.xlu0 %v1032_v15, %s893_s21  ;;  %v337_v50 = vld [vmem:[#allocation9 + $0x18] sm:$0xff]  ;;  %v339_v53 = vld [vmem:[#allocation9 + $0x28] sm:$0xff]  ;;  %v340_v55 = vld [vmem:[#allocation9 + $0x30] sm:$0xff] }
  0x51   :  { %v703_v51 = vpack.c.bf16 %v337_v50, %v336_v48  ;;  %v706_v54 = vpack.c.bf16 %v339_v53, %v338_v52  ;;  %v341_v56 = vld [vmem:[#allocation9 + $0x38] sm:$0xff] }
  0x52   :  { %698 = vmatpush3.bf16.msra.mxu1 %v697_v14  ;;  %692 = vmatpush3.bf16.msra.mxu0 %v691_v16  ;;  %v709_v58 = vpack.c.bf16 %v341_v56, %v340_v55  ;;  %v604_v4 = vld [vmem:[%s1135_s5 + $0x1] ss:$0 sm:$0xff]  ;;  %s896_s5 = smov [#allocation13]  }
  0x53   :  { %652 = vmatprep.subr.mxu1 %v892_v9  ;;  %699 = vmatprep.subr.bf16.mxu0 %v890_v1  ;;  %s585_s24 = sshll.u32 %s896_s5, 4  ;;  %s586_s24 = int_to_ptr.vmem [resolvable:$true] %s585_s24 }
  0x54   :  { %s829_s25 = scalar_lea.vmem %s586_s24, 128  ;;  %p834_p5 = scmp.lt.s32.totalorder %s586_s24, %s586_s24 }
  0x55   :  { %v121_v18 = vld [vmem:[#allocation2] sm:$0xff]  ;;  %p830_p4 = scmp.ne.s32.totalorder %s586_s24, %s829_s25  ;;  %p835_p6 = scmp.lt.s32.totalorder %s829_s25, %s829_s25 }
  0x56   :  { %653 = vmatpush3.msra.mxu1 %v127_v17  ;;  %642 = vmatmul.mubr.msk.f32.vlgmr.msra.gmra.mrb[0].mxu0 %vm93_vm1, %v121_v18 }
  0x57   :  { %711 = vmatprep.subr.bf16.mxu1 %v890_v1  ;;  %673 = vmatprep.mubr.msk.f32.mxu0 %vm891_vm0, %v892_v9  ;;  %p836_p7 = por %p835_p6, %p834_p5 }
  0x58   :  { %701 = vmatpush3.bf16.msra.mxu0 %v700_v49 }
  0x59   :  { %702 = vmatprep.subr.bf16.mxu0 %v890_v1  ;;  %p837_p8 = pnand %p836_p7, %p830_p4 }
  0x5c   :  { %704 = vmatpush3.bf16.msra.mxu0 %v703_v51 }
  0x5d   :  { %705 = vmatprep.subr.bf16.mxu0 %v890_v1 }
  0x60   :  { %707 = vmatpush3.bf16.msra.mxu0 %v706_v54 }
  0x61   :  { %708 = vmatprep.subr.bf16.mxu0 %v890_v1 }
  0x64   :  { %710 = vmatpush3.bf16.msra.mxu0 %v709_v58 }
  0xcb   :  { %v115_v21 = vpop.permute.xlu0 %114 }
  0xcc   :  { %vm116_vm3 = vcmp.eq.s32.totalorder %v112_v20, %v115_v21  ;;  %v461_v21 = vld [vmem:[#allocation10] sm:$0xff] }
  0xcd   :  { %v117_v22 = vsel %vm116_vm3, 1.0, %v892_v9 }
  0xce   :  { %655 = vmatmul.mubr.msk.f32.vlgmr.msra.gmra.mrb[0].mxu1 %vm206_vm2, %v117_v22  ;;  %v462_v22 = vld [vmem:[#allocation10 + $0x8] sm:$0xff] }
  0xcf   :  { %684 = vmatprep.mubr.msk.f32.mxu1 %vm891_vm0, %v892_v9  ;;  %v97_v23 = vpop.permute.xlu0 %96 }
  0xd0   :  { %99 = vst.msk [vmem:[#allocation3] sm:$0xff] %vm93_vm1, %v97_v23  ;;  %v463_v23 = vld [vmem:[#allocation10 + $0x10] sm:$0xff] }
  0xd7   :  { %v122_v38 = vld [vmem:[#allocation3] sm:$0xff] }
 0x129   :  { %v202_v24 = vpop.f32.mrb[0].mxu0 }
 0x12a   :  { %v643_v25 = vpop.f32.mrb[1].mxu0 }
 0x12b   :  { %v464_v25 = vld [vmem:[#allocation10 + $0x18] sm:$0xff] }
 0x1a1   :  { %v276_v26 = vpop.f32.mrb[0].mxu1 }
 0x1a2   :  { %v277_v28 = vadd.f32 %v276_v26, %v202_v24  ;;  %v656_v29 = vpop.f32.mrb[1].mxu1  ;;  %v712_v24 = vpack.c.bf16 %v462_v22, %v461_v21  ;;  %v715_v26 = vpack.c.bf16 %v464_v25, %v463_v23 }
 0x1a4   :  { %v287_v30 = vadd.f32 %v602_v27, %v277_v28  ;;  %713 = vmatpush3.bf16.msra.mxu1 %v712_v24 }
 0x1a5   :  { %714 = vmatprep.subr.bf16.mxu1 %v890_v1 }
 0x1a6   :  { %v288_v32 = vmul.f32 0.5, %v287_v30 }
 0x1a8   :  { %v289_v33 = vsel %vm1049_vm6, %v287_v30, %v288_v32  ;;  %716 = vmatpush3.bf16.msra.mxu1 %v715_v26 }
 0x1a9   :  { %733 = vtanh.f32 %v289_v33 }
 0x1b3   :  { %v734_v34 = vpop.eup %733 }
 0x1b4   :  { %v291_v35 = vadd.f32 1.0, %v734_v34 }
 0x1b6   :  { %v292_v36 = vmul.f32 0.5, %v291_v35 }
 0x1b8   :  { %v293_v37 = vsel %vm1049_vm6, %v734_v34, %v292_v36 }
 0x1b9   :  { %300 = vrot.lane.b32.xlu1 %v293_v37, %s893_s21 }
 0x1bd   :  { %295 = vrot.lane.b32.xlu1 %v122_v38, %s894_s17 }
 0x1c1   :  { %100 = vrot.lane.b32.xlu1 %v1032_v15, %s895_s19 }
 0x22b   :  { %v301_v39 = vpop.permute.xlu1 %300 }
 0x22c   :  { %v303_v40 = vmul.f32 %v301_v39, %v293_v37 }
 0x22e   :  { %305 = vrot.lane.b32.xlu0 %v303_v40, %s894_s17 }
 0x22f   :  { %v296_v41 = vpop.permute.xlu1 %295 }
 0x230   :  { %v298_v43 = vmul.f32 %v296_v41, %v293_v37 }
 0x233   :  { %v101_v42 = vpop.permute.xlu1 %100 }
 0x234   :  { %104 = vst.msk [vmem:[#allocation2 + $0x8] sm:$0xff] %vm93_vm1, %v101_v42 }
 0x23b   :  { %v326_v59 = vld [vmem:[#allocation2 + $0x8] sm:$0xff] }
 0x2a0   :  { %v306_v44 = vpop.permute.xlu0 %305 }
 0x2a1   :  { %v1063_v45 = vadd.f32 %v306_v44, %v298_v43 }
 0x2a3   :  { %735 = vtanh.f32 %v1063_v45 }
 0x2ad   :  { %v736_v57 = vpop.eup %735 }
 0x2ae   :  { %311 = vrot.lane.b32.xlu0 %v736_v57, %s893_s21 }
 0x2b2   :  { %330 = vrot.lane.b32.xlu0 %v326_v59, %s894_s17 }
 0x320   :  { %v312_v60 = vpop.permute.xlu0 %311 }
 0x321   :  { %v314_v61 = vmul.f32 %v312_v60, %v293_v37 }
 0x323   :  { %316 = vrot.lane.b32.xlu1 %v314_v61, %s894_s17 }
 0x324   :  { %v331_v62 = vpop.permute.xlu0 %330 }
 0x327   :  { %105 = vrot.lane.b32.xlu1 %v1032_v15, %s894_s17 }
 0x395   :  { %v317_v63 = vpop.permute.xlu1 %316 }
 0x396   :  { %319 = vst.msk [vmem:[#allocation2] sm:$0xff] %vm93_vm1, %v317_v63  ;;  %v333_v0 = vsel %vm93_vm1, %v317_v63, %v331_v62 }
 0x397   :  { %674 = vmatmul.mubr.msk.f32.vlgmr.msra.gmra.mrb[2].mxu0 %vm350_vm7, %v333_v0 }
 0x399   :  { %v106_v2 = vpop.permute.xlu1 %105 }
 0x39a   :  { %109 = vst.msk [vmem:[#allocation3 + $0x8] sm:$0xff] %vm93_vm1, %v106_v2 }
 0x39d   :  { %v548_v34 = vld [vmem:[#allocation2] sm:$0xff] }
 0x3a1   :  { %v328_v3 = vld [vmem:[#allocation3 + $0x8] sm:$0xff] }
 0x3a2   :  { %431 = vrot.lane.b32.xlu1 %v328_v3, %s894_s17 }
 0x414   :  { %v432_v16 = vpop.permute.xlu1 %431 }
 0x46a   :  { %v420_v5 = vpop.f32.mrb[2].mxu0 }
 0x46b   :  { %v421_v6 = vadd.f32 %v604_v4, %v420_v5  ;;  %v675_v7 = vpop.f32.mrb[3].mxu0 }
 0x46d   :  { %v424_v8 = vmul.f32 0.5, %v421_v6 }
 0x46f   :  { %v425_v9 = vsel %vm1049_vm6, %v421_v6, %v424_v8 }
 0x470   :  { %737 = vtanh.f32 %v425_v9 }
 0x47a   :  { %v738_v10 = vpop.eup %737 }
 0x47b   :  { %v427_v11 = vadd.f32 1.0, %v738_v10 }
 0x47d   :  { %v428_v12 = vmul.f32 0.5, %v427_v11 }
 0x47f   :  { %v429_v13 = vsel %vm1049_vm6, %v738_v10, %v428_v12 }
 0x480   :  { %436 = vrot.lane.b32.xlu0 %v429_v13, %s893_s21  ;;  %v434_v17 = vmul.f32 %v432_v16, %v429_v13 }
 0x4f2   :  { %v437_v14 = vpop.permute.xlu0 %436 }
 0x4f3   :  { %v439_v15 = vmul.f32 %v437_v14, %v429_v13 }
 0x4f5   :  { %441 = vrot.lane.b32.xlu0 %v439_v15, %s894_s17 }
 0x567   :  { %v442_v18 = vpop.permute.xlu0 %441 }
 0x568   :  { %v444_v19 = vadd.f32 %v442_v18, %v434_v17 }
 0x56a   :  { %739 = vtanh.f32 %v444_v19 }
 0x574   :  { %v740_v20 = vpop.eup %739 }
 0x575   :  { %447 = vrot.lane.b32.xlu1 %v740_v20, %s893_s21 }
 0x579   :  { %321 = vrot.lane.b32.xlu1 %v1063_v45, %s895_s19 }
 0x5e7   :  { %v448_v27 = vpop.permute.xlu1 %447 }
 0x5e8   :  { %v450_v28 = vmul.f32 %v448_v27, %v429_v13 }
 0x5ea   :  { %452 = vrot.lane.b32.xlu0 %v450_v28, %s894_s17 }
 0x5eb   :  { %v322_v29 = vpop.permute.xlu1 %321 }
 0x5ec   :  { %324 = vst.msk [vmem:[#allocation3] sm:$0xff] %vm93_vm1, %v322_v29 }
 0x5ee   :  { %457 = vrot.lane.b32.xlu0 %v444_v19, %s895_s19 }
 0x5f3   :  { %v550_v30 = vld [vmem:[#allocation3] sm:$0xff] }
 0x5f4   :  { %557 = vrot.lane.b32.xlu0 %v550_v30, %s893_s21 }
 0x65c   :  { %v453_v31 = vpop.permute.xlu0 %452 }
 0x65d   :  { %455 = vst.msk [vmem:[#allocation2 + $0x8] sm:$0xff] %vm93_vm1, %v453_v31  ;;  %685 = vmatmul.mubr.msk.f32.vlgmr.msra.gmra.mrb[2].mxu1 %vm93_vm1, %v453_v31 }
 0x660   :  { %v458_v1 = vpop.permute.xlu0 %457 }
 0x661   :  { %460 = vst.msk [vmem:[#allocation3 + $0x8] sm:$0xff] %vm93_vm1, %v458_v1 }
 0x664   :  { %v549_v32 = vld [vmem:[#allocation2 + $0x8] sm:$0xff] }
 0x665   :  { %553 = vrot.lane.b32.xlu1 %v549_v32, %s894_s17 }
 0x666   :  { %v558_v37 = vpop.permute.xlu0 %557 }
 0x668   :  { %v551_v33 = vld [vmem:[#allocation3 + $0x8] sm:$0xff] }
 0x669   :  { %561 = vrot.lane.b32.xlu1 %v551_v33, %s895_s19 }
 0x6d7   :  { %v554_v35 = vpop.permute.xlu1 %553 }
 0x6d8   :  { %v564_v36 = vsel %vm93_vm1, %v548_v34, %v554_v35 }
 0x6d9   :  { %v565_v38 = vsel %vm350_vm7, %v564_v36, %v558_v37 }
 0x6db   :  { %v562_v39 = vpop.permute.xlu1 %561 }
 0x6dc   :  { %v567_v40 = vsel %vm566_vm8, %v565_v38, %v562_v39 }
 0x6dd   :  { %568 = vst [vmem:[#allocation13] sm:$0xff] %v567_v40 }
 0x6de   :  { %840 = shalt.err (!%p837_p8)
}
 0x6df   :  { %s841_s12 = scalar_lea.hbm %s1139_s9, 128 }
 0x6e0   :  { %p842_p9 = scmp.ne.s32.totalorder %s1139_s9, %s841_s12  ;;  %p845_p10 = scmp.lt.u32.totalorder %s841_s12, %s1139_s9 }
 0x6e2   :  { %p847_p11 = pnand %p845_p10, %p842_p9 }
 0x6e4   :  { %850 = shalt.err (!%p847_p11)
}
 0x6e5   :  { %588 = dma.vmem_to_hbm [thread:$0]  %s586_s24, 128, %s1139_s9, [#allocation14]   ;;  %v606_v41 = vld [vmem:[%s1137_s7] ss:$0 sm:$0xff] }
 0x6e6   :  { %s897_s14 = smov [#allocation12]  }
 0x6e7   :  { %s575_s4 = sshll.u32 %s897_s14, 4  ;;  %s576_s4 = int_to_ptr.vmem [resolvable:$true] %s575_s4 }
 0x6e8   :  { %s851_s15 = scalar_lea.vmem %s576_s4, 128  ;;  %p856_p13 = scmp.lt.s32.totalorder %s576_s4, %s576_s4 }
 0x6e9   :  { %p852_p12 = scmp.ne.s32.totalorder %s576_s4, %s851_s15  ;;  %p857_p0 = scmp.lt.s32.totalorder %s851_s15, %s851_s15 }
 0x6eb   :  { %p858_p1 = por %p857_p0, %p856_p13 }
 0x6ed   :  { %p859_p2 = pnand %p858_p1, %p852_p12 }
 0x730   :  { %v540_v42 = vpop.f32.mrb[2].mxu1 }
 0x731   :  { %v541_v43 = vadd.f32 %v606_v41, %v540_v42  ;;  %v686_v44 = vpop.f32.mrb[3].mxu1 }
 0x733   :  { %544 = vst [vmem:[#allocation12] sm:$0xff] %v541_v43 }
 0x734   :  { %862 = shalt.err (!%p859_p2)
}
 0x735   :  { %s863_s18 = scalar_lea.hbm %s1138_s8, 128 }
 0x736   :  { %p864_p3 = scmp.ne.s32.totalorder %s1138_s8, %s863_s18  ;;  %p867_p4 = scmp.lt.u32.totalorder %s863_s18, %s1138_s8 }
 0x738   :  { %p869_p5 = pnand %p867_p4, %p864_p3 }
 0x73a   :  { %872 = shalt.err (!%p869_p5)
}
 0x73b   :  { %578 = dma.vmem_to_hbm [thread:$0]  %s576_s4, 128, %s1138_s8, [#allocation6]  }
 0x73c   :  { %879 = dma.done.wait [#allocation6], 128  }
 0x73d   :  { %880 = vsyncadd [#allocation6], 4294967168 }
 0x73e   :  { %881 = dma.done.wait [#allocation14], 128  }
 0x73f   :  { %882 = vsyncadd [#allocation14], 4294967168 }
 0x740   :  { %595 = vsyncpa [#allocation5], 1 }
 0x741   :  { %596 = vsyncpa [#allocation8], 1 }
 0x742   :  { %597 = vsyncpa [#allocation11], 1 }
 0x743   :  { %598 = vsyncpa [#allocation6], 1 }
 0x744   :  { %599 = vsyncpa [#allocation14], 1 }

</bundles_post_ra>
